<compile_context>
chip_gen: v7x
topology: tpu7x:2x2x1
jax: 0.10.0
libtpu: 0.0.40
codegen_flags: <defaults>
</compile_context>

<pallas_src>
import functools

import numpy as np
import jax
import jax.numpy as jnp
from jax.experimental import pallas as pl
from jax.experimental.pallas import tpu as pltpu

TWO_PI = 2.0 * np.pi
INV_TWO_PI = 1.0 / TWO_PI
LANES = 128
_MODES = ("rectangle", "triangle", "diagonal")


def _round_up(a, b):
    return -(-a // b) * b


def _phase_quant_kernel(*refs, bit, inv_gamma, mode, gamma_mode, const_scale):
    if gamma_mode in ("none", "const"):
        x_ref, o_ref = refs
        g_ref = None
    else:
        x_ref, g_ref, o_ref = refs

    x = x_ref[...].astype(jnp.float32)

    # x % (2*pi) via precomputed reciprocal (cheaper than jnp.mod's div path;
    # matches Python/PyTorch modulo semantics for negative inputs).
    x = x - TWO_PI * jnp.floor(x * INV_TWO_PI)

    if bit < 16:
        if mode in ("rectangle", "triangle"):
            ratio = TWO_PI / (2.0 ** bit - 1.0)
        elif mode == "diagonal":
            x = jnp.where(x > np.pi, TWO_PI - x, x)
            ratio = np.pi / (2.0 ** bit - 1.0)
        else:
            raise NotImplementedError(mode)
        x = jnp.round(x * (1.0 / ratio)) * ratio

    if gamma_mode == "full":
        x = x * (g_ref[...] * inv_gamma)        # noisy_gamma / gamma, elementwise
    elif gamma_mode == "scalar":
        x = x * (g_ref[0, 0] * inv_gamma)       # runtime scalar from SMEM
    elif gamma_mode == "const":
        x = x * const_scale                     # compile-time folded scalar

    o_ref[...] = x.astype(o_ref.dtype)          # in-kernel dtype cast


def phase_quantizer_forward(x, noisy_gamma=None, *, bit, v_pi=4.36,
                            mode="rectangle", crosstalk_factor=0.0,
                            max_block_rows=4096):
    """Pallas implementation of PhaseQuantizer.forward.

    x: phase array of any shape (any float dtype; compute is f32 in-register).
    noisy_gamma: None, a scalar, or an array broadcastable to x's shape.
    """
    if mode not in _MODES:
        raise NotImplementedError(mode)
    if crosstalk_factor > 1e-5:
        # TODO(synk): thermal-crosstalk simple_simulate needs
        # vector_to_checkerboard / checkerboard_to_vector helpers that are not
        # part of the provided source; raise instead of silently skipping.
        raise NotImplementedError("thermal crosstalk path is not implemented")

    gamma = float(np.pi / (v_pi ** 2))
    inv_gamma = 1.0 / gamma
    orig_shape = x.shape
    orig_dtype = x.dtype
    n = int(np.prod(orig_shape)) if len(orig_shape) else 1

    # ---- lane-dense slab layout: (rows, 128) ------------------------------
    itemsize = jnp.dtype(orig_dtype).itemsize
    sub = 8 * max(1, 4 // itemsize)                # sublane multiple per dtype
    m = _round_up(n, LANES) // LANES               # rows needed
    m_min = _round_up(max(m, 1), sub)
    if m_min <= max_block_rows:
        block_m = m_min                            # tiny input: one grid step
        m_pad = m_min
    else:
        block_m = _round_up(max_block_rows, sub)   # big tile (~2 MiB f32)
        m_pad = _round_up(m, block_m)
    n_pad = m_pad * LANES

    def to_slab(a):
        a = a.reshape(-1)
        if n_pad != n:                             # only ragged tails pad
            a = jnp.pad(a, (0, n_pad - n))
        return a.reshape(m_pad, LANES)

    operands = [to_slab(x)]
    in_specs = [pl.BlockSpec((block_m, LANES), lambda i: (i, 0))]

    gamma_mode = "none"
    const_scale = 1.0
    if noisy_gamma is not None:
        if isinstance(noisy_gamma, (int, float, np.floating, np.integer)) or (
                isinstance(noisy_gamma, np.ndarray) and noisy_gamma.size == 1):
            # Compile-time scalar: fold into the kernel, no extra operand.
            gamma_mode = "const"
            const_scale = float(np.asarray(noisy_gamma).reshape(())) * inv_gamma
        else:
            g = jnp.asarray(noisy_gamma, dtype=jnp.float32)
            if g.size == 1:
                # Traced scalar gamma: one SMEM word, no extra HBM stream.
                gamma_mode = "scalar"
                operands.append(g.reshape(1, 1))
                in_specs.append(
                    pl.BlockSpec(memory_space=pltpu.MemorySpace.SMEM))
            else:
                gamma_mode = "full"
                if g.shape != orig_shape:
                    # TODO(synk): broadcast gamma could be streamed without
                    # materialization; set_gamma_noise always makes a full-size
                    # tensor, so this fallback is effectively never hit.
                    g = jnp.broadcast_to(g, orig_shape)
                operands.append(to_slab(g))
                in_specs.append(
                    pl.BlockSpec((block_m, LANES), lambda i: (i, 0)))

    kernel = functools.partial(
        _phase_quant_kernel,
        bit=bit, inv_gamma=inv_gamma, mode=mode,
        gamma_mode=gamma_mode, const_scale=const_scale,
    )

    out = pl.pallas_call(
        kernel,
        out_shape=jax.ShapeDtypeStruct((m_pad, LANES), orig_dtype),
        grid_spec=pltpu.PrefetchScalarGridSpec(
            num_scalar_prefetch=0,
            grid=(m_pad // block_m,),
            in_specs=in_specs,
            out_specs=pl.BlockSpec((block_m, LANES), lambda i: (i, 0)),
        ),
        compiler_params=pltpu.CompilerParams(
            dimension_semantics=("parallel",),
            vmem_limit_bytes=64 << 20),
    )(*operands)

    if n_pad != n:                                 # ragged tail: strip padding
        out = out.reshape(-1)[:n]
    return out.reshape(orig_shape)


def _reference_forward(x, noisy_gamma, *, bit, v_pi=4.36, mode="rectangle"):
    # Pure-JAX mirror of PhaseQuantizer.forward (same float math as the kernel
    # so the check is not sensitive to quantizer-bin boundary rounding).
    gamma = np.pi / (v_pi ** 2)
    xf = x.astype(jnp.float32)
    xf = xf - TWO_PI * jnp.floor(xf * INV_TWO_PI)
    if bit < 16:
        if mode in ("rectangle", "triangle"):
            ratio = TWO_PI / (2.0 ** bit - 1.0)
        else:
            xf = jnp.where(xf > np.pi, TWO_PI - xf, xf)
            ratio = np.pi / (2.0 ** bit - 1.0)
        xf = jnp.round(xf * (1.0 / ratio)) * ratio
    if noisy_gamma is not None:
        xf = xf * (jnp.asarray(noisy_gamma, jnp.float32) * (1.0 / gamma))
    return xf.astype(x.dtype)


if __name__ == "__main__":
    key = jax.random.PRNGKey(0)
    kx, kg, kr = jax.random.split(key, 3)

    bit, v_pi = 4, 4.36
    gamma = np.pi / (v_pi ** 2)

    # Small phase tensor, NCHW-like shape (2, 4, 16, 16).
    x = jax.random.uniform(kx, (2, 4, 16, 16), dtype=jnp.float32,
                           minval=-4.0 * np.pi, maxval=4.0 * np.pi)

    # 1) No gamma noise (noisy_gamma buffer is None), rectangle mode.
    out = jax.block_until_ready(
        phase_quantizer_forward(x, None, bit=bit, v_pi=v_pi, mode="rectangle"))
    ref = _reference_forward(x, None, bit=bit, v_pi=v_pi, mode="rectangle")
    np.testing.assert_allclose(np.asarray(out), np.asarray(ref), rtol=1e-5, atol=1e-5)

    # 2) Full-size noisy_gamma (mimicking set_gamma_noise), rectangle mode.
    noisy_gamma = (jax.random.truncated_normal(kg, -2.0, 2.0, x.shape, jnp.float32)
                   * 0.002 + gamma)
    out = jax.block_until_ready(
        phase_quantizer_forward(x, noisy_gamma, bit=bit, v_pi=v_pi, mode="rectangle"))
    ref = _reference_forward(x, noisy_gamma, bit=bit, v_pi=v_pi, mode="rectangle")
    np.testing.assert_allclose(np.asarray(out), np.asarray(ref), rtol=1e-5, atol=1e-5)

    # 3a) Traced scalar noisy_gamma (SMEM path), diagonal mode.
    scalar_gamma = jnp.float32(gamma + 1e-3)
    out = jax.block_until_ready(
        phase_quantizer_forward(x, scalar_gamma, bit=bit, v_pi=v_pi, mode="diagonal"))
    ref = _reference_forward(x, scalar_gamma, bit=bit, v_pi=v_pi, mode="diagonal")
    np.testing.assert_allclose(np.asarray(out), np.asarray(ref), rtol=1e-5, atol=1e-5)

    # 3b) Compile-time scalar noisy_gamma (constant-folded path), diagonal mode.
    out = jax.block_until_ready(
        phase_quantizer_forward(x, float(gamma + 1e-3), bit=bit, v_pi=v_pi,
                                mode="diagonal"))
    ref = _reference_forward(x, jnp.float32(gamma + 1e-3), bit=bit, v_pi=v_pi,
                             mode="diagonal")
    np.testing.assert_allclose(np.asarray(out), np.asarray(ref), rtol=1e-5, atol=1e-5)

    # 4) Ragged size (exercises the pad/slice tail path), triangle mode.
    xr = jax.random.uniform(kr, (3, 5, 7), dtype=jnp.float32,
                            minval=-2.0 * np.pi, maxval=2.0 * np.pi)
    out = jax.block_until_ready(
        phase_quantizer_forward(xr, None, bit=8, v_pi=v_pi, mode="triangle"))
    ref = _reference_forward(xr, None, bit=8, v_pi=v_pi, mode="triangle")
    np.testing.assert_allclose(np.asarray(out), np.asarray(ref), rtol=1e-5, atol=1e-5)

    print("KERNEL_OK")
</pallas_src>

<mosaic_0001>
module attributes {stable_mosaic.version = 11 : i64} {
  func.func @_phase_quant_kernel(%arg0: i32, %arg1: memref<16x128xf32, #tpu.memory_space<vmem>>, %arg2: memref<16x128xf32, #tpu.memory_space<vmem>>) attributes {dimension_semantics = [#tpu.dimension_semantics<parallel>], iteration_bounds = array<i64: 1>, scalar_prefetch = 0 : i64, scratch_operands = 0 : i64, tpu.core_type = #tpu.core_type<tc>, window_params = [{transform_indices = @transform_0, window_bounds = array<i64: 16, 128>}, {transform_indices = @transform_1, window_bounds = array<i64: 16, 128>}]} {
    %c0 = arith.constant 0 : index
    %c0_0 = arith.constant 0 : index
    %0 = vector.load %arg1[%c0, %c0_0] : memref<16x128xf32, #tpu.memory_space<vmem>>, vector<16x128xf32>
    %cst = arith.constant 0.159154937 : f32
    %1 = vector.broadcast %cst : f32 to vector<16x128xf32>
    %2 = arith.mulf %0, %1 : vector<16x128xf32>
    %3 = math.floor %2 : vector<16x128xf32>
    %cst_1 = arith.constant 6.28318548 : f32
    %4 = vector.broadcast %cst_1 : f32 to vector<16x128xf32>
    %5 = arith.mulf %4, %3 : vector<16x128xf32>
    %6 = arith.subf %0, %5 : vector<16x128xf32>
    %cst_2 = arith.constant 2.38732409 : f32
    %7 = vector.broadcast %cst_2 : f32 to vector<16x128xf32>
    %8 = arith.mulf %6, %7 : vector<16x128xf32>
    %9 = math.roundeven %8 : vector<16x128xf32>
    %cst_3 = arith.constant 0.418879032 : f32
    %10 = vector.broadcast %cst_3 : f32 to vector<16x128xf32>
    %11 = arith.mulf %9, %10 : vector<16x128xf32>
    %c0_4 = arith.constant 0 : index
    %c0_5 = arith.constant 0 : index
    %12 = vector.load %arg2[%c0_4, %c0_5] : memref<16x128xf32, #tpu.memory_space<vmem>>, vector<16x128xf32>
    tpu.vector_store %arg2[%c0_4, %c0_5], %11 {strides = array<i32>} : memref<16x128xf32, #tpu.memory_space<vmem>>, vector<16x128xf32>,
    return
  }
  func.func @transform_0(%arg0: i32) -> (i32, i32) {
    %c0_i32 = arith.constant 0 : i32
    %c0_i32_0 = arith.constant 0 : i32
    return %arg0, %c0_i32 : i32, i32
  }
  func.func @transform_1(%arg0: i32) -> (i32, i32) {
    %c0_i32 = arith.constant 0 : i32
    %c0_i32_0 = arith.constant 0 : i32
    return %arg0, %c0_i32 : i32, i32
  }
}

</mosaic_0001>

<bundles_post_ra>
// kernel: tpu_custom_call.1
= control target key start
LH: loop header
LB: loop body
LE: loop exit
PB: predicated region body
PF: predicated region fallthrough
CT: control target
= control target key end

     0   :  { %6 = vsyncpa [#allocation3], 0  ;;  %s156_s0 = inlined_call_operand.hbm [shape: f32[16,128], index: 0, kind: input, shape index: {}]   ;;  %s157_s1 = inlined_call_operand.hbm [shape: f32[16,128], index: 1, kind: output, shape index: {}]  }
   0x1   :  { %7 = vsyncpa [#allocation4], 0  ;;  %s112_s6 = smov [#allocation2]   ;;  %s64_s10 = scalar_lea.hbm %s156_s0, 256 }
   0x2   :  { %s13_s7 = sshll.u32 %s112_s6, 4  ;;  %p65_p0 = scmp.ne.s32.totalorder %s156_s0, %s64_s10  ;;  %s14_s7 = int_to_ptr.vmem [resolvable:$true] %s13_s7 }
   0x3   :  { %p68_p1 = scmp.lt.u32.totalorder %s64_s10, %s156_s0 }
   0x5   :  { %p70_p2 = pnand %p68_p1, %p65_p0 }
   0x7   :  { %73 = shalt.err (!%p70_p2)
}
   0x8   :  { %s74_s15 = scalar_lea.vmem %s14_s7, 256  ;;  %p79_p4 = scmp.lt.s32.totalorder %s14_s7, %s14_s7 }
   0x9   :  { %p75_p3 = scmp.ne.s32.totalorder %s14_s7, %s74_s15  ;;  %p80_p5 = scmp.lt.s32.totalorder %s74_s15, %s74_s15 }
   0xb   :  { %p81_p6 = por %p80_p5, %p79_p4 }
   0xd   :  { %p82_p7 = pnand %p81_p6, %p75_p3 }
   0xf   :  { %85 = shalt.err (!%p82_p7)
}
  0x10   :  { %s113_s16 = smov 128   ;;  %s114_s17 = smov 8  }
  0x11   :  { %19 = dma.hbm_to_vmem [thread:$0]  %s156_s0, 256, %s14_s7, [#allocation3], %s113_s16, %s113_s16, %s114_s17  }
  0x12   :  { %108 = dma.done.wait [#allocation3], 256  }
  0x13   :  { %109 = vsyncadd [#allocation3], 4294967040  ;;  %v23_v0 = vld [vmem:[#allocation2] sm:$0xff]  ;;  %v24_v1 = vld [vmem:[#allocation2 + $0x8] sm:$0xff]  ;;  %s115_s20 = smov [#allocation5]  }
  0x14   :  { %v25_v2 = vmul.f32 0.15915494, %v23_v0  ;;  %v26_v3 = vmul.f32 0.15915494, %v24_v1  ;;  %s46_s21 = sshll.u32 %s115_s20, 4  ;;  %s47_s21 = int_to_ptr.vmem [resolvable:$true] %s46_s21 }
  0x15   :  { %s86_s0 = scalar_lea.vmem %s47_s21, 256  ;;  %p91_p9 = scmp.lt.s32.totalorder %s47_s21, %s47_s21 }
  0x16   :  { %v27_v4 = vfloor.f32 %v25_v2  ;;  %v28_v5 = vfloor.f32 %v26_v3  ;;  %p87_p8 = scmp.ne.s32.totalorder %s47_s21, %s86_s0  ;;  %p92_p10 = scmp.lt.s32.totalorder %s86_s0, %s86_s0 }
  0x18   :  { %v29_v6 = vmul.f32 6.2831855, %v27_v4  ;;  %v30_v7 = vmul.f32 6.2831855, %v28_v5  ;;  %p93_p11 = por %p92_p10, %p91_p9 }
  0x1a   :  { %v31_v8 = vsub.f32 %v23_v0, %v29_v6  ;;  %v32_v9 = vsub.f32 %v24_v1, %v30_v7  ;;  %p94_p12 = pnand %p93_p11, %p87_p8 }
  0x1c   :  { %v33_v10 = vmul.f32 2.387324, %v31_v8  ;;  %v34_v11 = vmul.f32 2.387324, %v32_v9 }
  0x1e   :  { %v58_v12 = vround.rtne.f32 %v33_v10  ;;  %v59_v13 = vround.rtne.f32 %v34_v11 }
  0x20   :  { %v37_v14 = vmul.f32 0.41887903, %v58_v12  ;;  %v38_v15 = vmul.f32 0.41887903, %v59_v13 }
  0x22   :  { %39 = vst [vmem:[#allocation5] sm:$0xff] %v37_v14  ;;  %40 = vst [vmem:[#allocation5 + $0x8] sm:$0xff] %v38_v15 }
  0x23   :  { %97 = shalt.err (!%p94_p12)
}
  0x24   :  { %s98_s24 = scalar_lea.hbm %s157_s1, 256 }
  0x25   :  { %p99_p13 = scmp.ne.s32.totalorder %s157_s1, %s98_s24  ;;  %p102_p0 = scmp.lt.u32.totalorder %s98_s24, %s157_s1 }
  0x27   :  { %p104_p1 = pnand %p102_p0, %p99_p13 }
  0x29   :  { %107 = shalt.err (!%p104_p1)
}
  0x2a   :  { %52 = dma.vmem_to_hbm [thread:$0]  %s47_s21, 256, %s157_s1, [#allocation4], %s113_s16, %s113_s16, %s114_s17  }
  0x2b   :  { %110 = dma.done.wait [#allocation4], 256  }
  0x2c   :  { %111 = vsyncadd [#allocation4], 4294967040 }
  0x2d   :  { %56 = vsyncpa [#allocation3], 1 }
  0x2e   :  { %57 = vsyncpa [#allocation4], 1 }

</bundles_post_ra>
